<compile_context>
chip_gen: v6e
topology: v6e:2x2x1
jax: 0.10.0
libtpu: 0.0.40
codegen_flags: <defaults>
</compile_context>

<pallas_src>
import functools

import jax
import jax.numpy as jnp
from jax.experimental import pallas as pl
from jax.experimental.pallas import tpu as pltpu

LANES = 128
SUBLANES = 8


# ---------------------------------------------------------------------------
# Device-generation heuristics (safe fallbacks if detection fails).
# ---------------------------------------------------------------------------
def _device_kind() -> str:
    try:
        return jax.devices()[0].device_kind.lower()
    except Exception:
        return ""


def _is_v7x() -> bool:
    k = _device_kind()
    return ("v7" in k) or ("7x" in k)


def _default_tile_rows() -> int:
    # 1 MiB f32 blocks by default (safe within v5e's 16 MiB scoped-VMEM
    # default and v7x's 32 MiB scoped / 64 MiB physical); 2 MiB on v6e.
    return 4096 if "v6" in _device_kind() else 2048


# ---------------------------------------------------------------------------
# Kernel bodies.
# ---------------------------------------------------------------------------
def _tile_loss(x, y, eps, approx):
    """|(x - y) / (stop_grad(x) + eps)| on one VMEM tile, computed in f32."""
    xf = x.astype(jnp.float32)
    yf = y.astype(jnp.float32)
    denom = jax.lax.stop_gradient(xf) + eps          # matches x.detach() + eps
    diff = xf - yf
    if approx:
        # v7x: EUP approx reciprocal keeps the VALU slot free (HBM-bound).
        return jnp.abs(diff * pl.reciprocal(denom, approx=True))
    return jnp.abs(diff / denom)


def _tile_partial_sum(x_ref, y_ref, *, eps, n, needs_mask, approx, chunk):
    """(8,128) f32 partial sum of the loss over this grid step's tile.

    Single chunked pass (static Python loop, `chunk` rows at a time): the
    (tm,128) f32 loss intermediate is never materialized in VMEM, and the
    ragged tail (global element index >= n) is masked to zero in-kernel so
    no wrapper-side padding to the tile size is ever needed.
    """
    i = pl.program_id(0)
    tm = x_ref.shape[0]
    acc = jnp.zeros((SUBLANES, LANES), jnp.float32)
    for c in range(tm // chunk):
        r0 = c * chunk                                            # static
        loss = _tile_loss(x_ref[pl.ds(r0, chunk), :],
                          y_ref[pl.ds(r0, chunk), :], eps, approx)
        if needs_mask:
            row = jax.lax.broadcasted_iota(jnp.int32, (chunk, LANES), 0)
            col = jax.lax.broadcasted_iota(jnp.int32, (chunk, LANES), 1)
            gidx = (i * tm + r0 + row) * LANES + col   # global element index
            loss = jnp.where(gidx < n, loss, 0.0)
        acc = acc + loss.reshape(chunk // SUBLANES, SUBLANES, LANES).sum(axis=0)
    return acc


def _hdr_mean_acc_kernel(x_ref, y_ref, out_ref, *,
                         eps, n, needs_mask, approx, chunk):
    """Single-TC mean path: resident (8,128) output accumulator."""
    @pl.when(pl.program_id(0) == 0)
    def _init():
        out_ref[...] = jnp.zeros_like(out_ref)

    out_ref[...] += _tile_partial_sum(x_ref, y_ref, eps=eps, n=n,
                                      needs_mask=needs_mask, approx=approx,
                                      chunk=chunk)


def _hdr_mean_partials_kernel(x_ref, y_ref, out_ref, *,
                              eps, n, needs_mask, approx, chunk):
    """v7x mean path: distinct (8,128) partial block per grid step."""
    out_ref[...] = _tile_partial_sum(x_ref, y_ref, eps=eps, n=n,
                                     needs_mask=needs_mask, approx=approx,
                                     chunk=chunk)


def _hdr_none_kernel(x_ref, y_ref, o_ref, *, eps, approx):
    """Elementwise loss; out-of-bounds rows of a partial last output block
    are dropped by the pipeline on writeback (no masking needed)."""
    o_ref[...] = _tile_loss(x_ref[...], y_ref[...], eps, approx).astype(o_ref.dtype)


# ---------------------------------------------------------------------------
# Wrapper.
# ---------------------------------------------------------------------------
def _prepare(x, y):
    """Free-reshape both inputs to lane-dense (rows, 128).

    Pads (one extra pass over the inputs) ONLY when x.size is not a multiple
    of 128 -- never up to a multiple of the row tile.
    """
    n = x.size
    if n % LANES == 0:
        rows = n // LANES
        return x.reshape(rows, LANES), y.reshape(rows, LANES), n, rows, False
    rows = pl.cdiv(n, LANES)
    pad = rows * LANES - n
    xf = jnp.pad(x.reshape(-1), (0, pad))
    yf = jnp.pad(y.reshape(-1), (0, pad))
    return xf.reshape(rows, LANES), yf.reshape(rows, LANES), n, rows, True


def _pick_tm(rows, tile_rows, itemsize):
    """Row tile: multiple of 8, clamped for small inputs, dtype-aware so DMA
    chunks stay ~1-2 MiB for 16-bit inputs too."""
    tile_rows = max(SUBLANES, (int(tile_rows) // SUBLANES) * SUBLANES)
    if itemsize < 4:
        tile_rows *= 2
    rows8 = pl.cdiv(rows, SUBLANES) * SUBLANES
    return min(tile_rows, rows8)


def _pick_chunk(tm):
    """Largest row chunk (multiple of 8, <=128) dividing the row tile."""
    for c in (128, 64, 32, 16, 8):
        if tm % c == 0:
            return c
    return tm


def hdr_loss(x, y, epsilon=0.1, reduction="mean", tile_rows=None,
             multi_core=None, approx_recip=None):
    """HDRLoss.forward in Pallas.  x, y: equal-shape float arrays (e.g. NCHW)."""
    if reduction not in ("mean", "none"):
        raise ValueError("Unknown reduction: ", reduction)
    if x.shape != y.shape:
        raise ValueError("x and y must have the same shape")

    if tile_rows is None:
        tile_rows = _default_tile_rows()
    if multi_core is None:          # 2 TensorCores per chip -> shard the grid
        multi_core = _is_v7x()
    if approx_recip is None:        # EUP reciprocal only where the VALU binds
        approx_recip = _is_v7x()
    eps = float(epsilon)

    x2, y2, n, rows, padded = _prepare(x, y)
    tm = _pick_tm(rows, tile_rows, x.dtype.itemsize)
    chunk = _pick_chunk(tm)
    grid = (pl.cdiv(rows, tm),)
    # True only when the grid footprint overshoots the true element count
    # (ragged last tile and/or 128-padding); zero overhead otherwise.
    needs_mask = (grid[0] * tm * LANES != n)

    in_specs = [
        pl.BlockSpec((tm, LANES), lambda i: (i, 0)),
        pl.BlockSpec((tm, LANES), lambda i: (i, 0)),
    ]

    if reduction == "mean":
        common = dict(eps=eps, n=n, needs_mask=needs_mask,
                      approx=approx_recip, chunk=chunk)
        if multi_core:
            kernel = functools.partial(_hdr_mean_partials_kernel, **common)
            out_rows, out_map = grid[0] * SUBLANES, (lambda i: (i, 0))
            semantics = ("parallel",)
        else:
            kernel = functools.partial(_hdr_mean_acc_kernel, **common)
            out_rows, out_map = SUBLANES, (lambda i: (0, 0))
            semantics = ("arbitrary",)
        partials = pl.pallas_call(
            kernel,
            out_shape=jax.ShapeDtypeStruct((out_rows, LANES), jnp.float32),
            grid_spec=pltpu.PrefetchScalarGridSpec(
                num_scalar_prefetch=0,
                grid=grid,
                in_specs=in_specs,
                out_specs=pl.BlockSpec((SUBLANES, LANES), out_map),
            ),
            compiler_params=pltpu.CompilerParams(
                dimension_semantics=semantics),
        )(x2, y2)
        # Follow-up is a tiny fused sum (4 KiB on the single-TC path) plus the
        # mean normalization; the grid-sized partials round-trip is gone.
        return jnp.sum(partials) / jnp.float32(n)

    # reduction == "none": pure 3-stream (2 in, 1 out) elementwise kernel.
    out_dtype = jnp.result_type(x.dtype, y.dtype)
    out = pl.pallas_call(
        functools.partial(_hdr_none_kernel, eps=eps, approx=approx_recip),
        out_shape=jax.ShapeDtypeStruct((rows, LANES), out_dtype),
        grid_spec=pltpu.PrefetchScalarGridSpec(
            num_scalar_prefetch=0,
            grid=grid,
            in_specs=in_specs,
            out_specs=pl.BlockSpec((tm, LANES), lambda i: (i, 0)),
        ),
        compiler_params=pltpu.CompilerParams(
            dimension_semantics=("parallel",)),
    )(x2, y2)
    if padded:
        # Rare fallback (x.size % 128 != 0): one extra output pass.
        out = out.reshape(-1)[:n]
    return out.reshape(x.shape)


if __name__ == "__main__":
    key = jax.random.PRNGKey(0)
    kx, ky = jax.random.split(key)

    eps = 0.1
    # Exact divide on v5e/v6e -> tight tolerance; EUP approx reciprocal on
    # v7x -> loosen the check accordingly.
    approx = _is_v7x()
    rtol, atol = (2e-3, 1e-5) if approx else (1e-5, 1e-6)

    # 1) Tile-aligned NCHW inputs (2*4*16*16 = 2048 elements).
    x = jax.random.uniform(kx, (2, 4, 16, 16), dtype=jnp.float32) + 0.5
    y = jax.random.uniform(ky, (2, 4, 16, 16), dtype=jnp.float32) + 0.5

    loss_mean = hdr_loss(x, y, epsilon=eps, reduction="mean")
    jax.block_until_ready(loss_mean)
    loss_none = hdr_loss(x, y, epsilon=eps, reduction="none")
    jax.block_until_ready(loss_none)

    ref_none = jnp.abs((x - y) / (x + eps))
    ref_mean = ref_none.mean()
    assert loss_none.shape == x.shape
    assert jnp.allclose(loss_mean, ref_mean, rtol=rtol, atol=atol)
    assert jnp.allclose(loss_none, ref_none, rtol=rtol, atol=atol)

    # 2) Ragged-tail case: 2*5*16*16 = 2560 elements = 20 rows of 128; with
    #    tile_rows=8 the last (8,128) block is partial, exercising the
    #    in-kernel mask (mean) and OOB-write drop ('none') with NO jnp.pad
    #    and NO output slice.
    xr = jax.random.uniform(kx, (2, 5, 16, 16), dtype=jnp.float32) + 0.5
    yr = jax.random.uniform(ky, (2, 5, 16, 16), dtype=jnp.float32) + 0.5

    lm = hdr_loss(xr, yr, epsilon=eps, reduction="mean", tile_rows=8)
    jax.block_until_ready(lm)
    ln = hdr_loss(xr, yr, epsilon=eps, reduction="none", tile_rows=8)
    jax.block_until_ready(ln)

    rn = jnp.abs((xr - yr) / (xr + eps))
    assert ln.shape == xr.shape
    assert jnp.allclose(lm, rn.mean(), rtol=rtol, atol=atol)
    assert jnp.allclose(ln, rn, rtol=rtol, atol=atol)

    print("KERNEL_OK")
</pallas_src>

<mosaic_0001>
module attributes {stable_mosaic.version = 11 : i64} {
  func.func @_hdr_mean_acc_kernel(%arg0: i32, %arg1: memref<16x128xf32, #tpu.memory_space<vmem>>, %arg2: memref<16x128xf32, #tpu.memory_space<vmem>>, %arg3: memref<8x128xf32, #tpu.memory_space<vmem>>) attributes {dimension_semantics = [#tpu.dimension_semantics<arbitrary>], iteration_bounds = array<i64: 1>, scalar_prefetch = 0 : i64, scratch_operands = 0 : i64, tpu.core_type = #tpu.core_type<tc>, window_params = [{transform_indices = @transform_0, window_bounds = array<i64: 16, 128>}, {transform_indices = @transform_1, window_bounds = array<i64: 16, 128>}, {pipeline_mode = #tpu.pipeline_mode<synchronous>, transform_indices = @transform_2, window_bounds = array<i64: 8, 128>}]} {
    %c0_i32 = arith.constant 0 : i32
    %0 = arith.cmpi eq, %arg0, %c0_i32 : i32
    %1 = arith.extui %0 : i1 to i32
    %c0_i32_0 = arith.constant 0 : i32
    %2 = arith.cmpi ne, %1, %c0_i32_0 : i32
    scf.if %2 {
      %cst_10 = arith.constant 0.000000e+00 : f32
      %17 = vector.broadcast %cst_10 : f32 to vector<8x128xf32>
      %c0_11 = arith.constant 0 : index
      %c0_12 = arith.constant 0 : index
      %18 = vector.load %arg3[%c0_11, %c0_12] : memref<8x128xf32, #tpu.memory_space<vmem>>, vector<8x128xf32>
      tpu.vector_store %arg3[%c0_11, %c0_12], %17 {strides = array<i32>} : memref<8x128xf32, #tpu.memory_space<vmem>>, vector<8x128xf32>,
    } else {
    }
    %c0 = arith.constant 0 : index
    %c0_1 = arith.constant 0 : index
    %3 = vector.load %arg3[%c0, %c0_1] : memref<8x128xf32, #tpu.memory_space<vmem>>, vector<8x128xf32>
    %cst = arith.constant 0.000000e+00 : f32
    %4 = vector.broadcast %cst : f32 to vector<8x128xf32>
    %c0_2 = arith.constant 0 : index
    %c0_3 = arith.constant 0 : index
    %5 = vector.load %arg1[%c0_2, %c0_3] : memref<16x128xf32, #tpu.memory_space<vmem>>, vector<16x128xf32>
    %c0_4 = arith.constant 0 : index
    %c0_5 = arith.constant 0 : index
    %6 = vector.load %arg2[%c0_4, %c0_5] : memref<16x128xf32, #tpu.memory_space<vmem>>, vector<16x128xf32>
    %cst_6 = arith.constant 1.000000e-01 : f32
    %7 = vector.broadcast %cst_6 : f32 to vector<16x128xf32>
    %8 = arith.addf %5, %7 : vector<16x128xf32>
    %9 = arith.subf %5, %6 : vector<16x128xf32>
    %10 = arith.divf %9, %8 : vector<16x128xf32>
    %11 = math.absf %10 : vector<16x128xf32>
    %12 = vector.shape_cast %11 : vector<16x128xf32> to vector<2x8x128xf32>
    %cst_7 = arith.constant dense<0.000000e+00> : vector<8x128xf32>
    %13 = vector.multi_reduction <add>, %12, %cst_7 [0] : vector<2x8x128xf32> to vector<8x128xf32>
    %14 = arith.addf %4, %13 : vector<8x128xf32>
    %15 = arith.addf %3, %14 : vector<8x128xf32>
    %c0_8 = arith.constant 0 : index
    %c0_9 = arith.constant 0 : index
    %16 = vector.load %arg3[%c0_8, %c0_9] : memref<8x128xf32, #tpu.memory_space<vmem>>, vector<8x128xf32>
    tpu.vector_store %arg3[%c0_8, %c0_9], %15 {strides = array<i32>} : memref<8x128xf32, #tpu.memory_space<vmem>>, vector<8x128xf32>,
    return
  }
  func.func @transform_0(%arg0: i32) -> (i32, i32) {
    %c0_i32 = arith.constant 0 : i32
    %c0_i32_0 = arith.constant 0 : i32
    return %arg0, %c0_i32 : i32, i32
  }
  func.func @transform_1(%arg0: i32) -> (i32, i32) {
    %c0_i32 = arith.constant 0 : i32
    %c0_i32_0 = arith.constant 0 : i32
    return %arg0, %c0_i32 : i32, i32
  }
  func.func @transform_2(%arg0: i32) -> (i32, i32) {
    %c0_i32 = arith.constant 0 : i32
    %c0_i32_0 = arith.constant 0 : i32
    %c0_i32_1 = arith.constant 0 : i32
    return %c0_i32, %c0_i32_0 : i32, i32
  }
}

</mosaic_0001>

<bundles_post_ra>
// kernel: tpu_custom_call.1
= control target key start
LH: loop header
LB: loop body
LE: loop exit
PB: predicated region body
PF: predicated region fallthrough
CT: control target
= control target key end

     0   :  { %7 = vsyncpa [#allocation3], 0  ;;  %s185_s0 = inlined_call_operand.hbm [shape: f32[16,128], index: 0, kind: input, shape index: {}]   ;;  %s186_s1 = inlined_call_operand.hbm [shape: f32[16,128], index: 1, kind: input, shape index: {}]   ;;  %s187_s2 = inlined_call_operand.hbm [shape: f32[8,128], index: 2, kind: output, shape index: {}]  }
   0x1   :  { %8 = vsyncpa [#allocation6], 0 }
   0x2   :  { %9 = vsyncpa [#allocation4], 0  ;;  %s156_s9 = smov [#allocation2]  }
   0x3   :  { %s15_s10 = sshll.u32 %s156_s9, 4  ;;  %s16_s10 = int_to_ptr.vmem [resolvable:$true] %s15_s10 }
   0x4   :  { %s98_s11 = scalar_lea.vmem %s16_s10, 256  ;;  %p103_p1 = scmp.lt.s32.totalorder %s16_s10, %s16_s10 }
   0x5   :  { %p99_p0 = scmp.ne.s32.totalorder %s16_s10, %s98_s11  ;;  %p104_p2 = scmp.lt.s32.totalorder %s98_s11, %s98_s11 }
   0x7   :  { %p105_p3 = por %p104_p2, %p103_p1 }
   0x9   :  { %p106_p4 = pnand %p105_p3, %p99_p0 }
   0xb   :  { %109 = shalt.err (!%p106_p4)
}
   0xc   :  { %s157_s12 = smov 128   ;;  %s158_s13 = smov 8  }
   0xd   :  { %21 = dma.hbm_to_vmem [thread:$0]  %s185_s0, 256, %s16_s10, [#allocation3], %s157_s12, %s157_s12, %s158_s13  }
   0xe   :  { %s159_s16 = smov [#allocation5]  }
   0xf   :  { %s27_s17 = sshll.u32 %s159_s16, 4  ;;  %s28_s17 = int_to_ptr.vmem [resolvable:$true] %s27_s17 }
  0x10   :  { %s118_s18 = scalar_lea.vmem %s28_s17, 256  ;;  %p123_p6 = scmp.lt.s32.totalorder %s28_s17, %s28_s17 }
  0x11   :  { %p119_p5 = scmp.ne.s32.totalorder %s28_s17, %s118_s18  ;;  %p124_p7 = scmp.lt.s32.totalorder %s118_s18, %s118_s18 }
  0x13   :  { %p125_p8 = por %p124_p7, %p123_p6 }
  0x15   :  { %p126_p9 = pnand %p125_p8, %p119_p5 }
  0x17   :  { %129 = shalt.err (!%p126_p9)
}
  0x18   :  { %33 = dma.hbm_to_vmem [thread:$0]  %s186_s1, 256, %s28_s17, [#allocation6], %s157_s12, %s157_s12, %s158_s13  }
  0x19   :  { %150 = dma.done.wait [#allocation3], 256  }
  0x1a   :  { %151 = vsyncadd [#allocation3], 4294967040 }
  0x1b   :  { %152 = dma.done.wait [#allocation6], 256  }
  0x1c   :  { %153 = vsyncadd [#allocation6], 4294967040  ;;  %v46_v0 = vld [vmem:[#allocation2] sm:$0xff]  ;;  %v47_v1 = vld [vmem:[#allocation2 + $0x8] sm:$0xff]  ;;  %s160_s0 = smov [#allocation7]  }
  0x1d   :  { %v50_v2 = vadd.f32 0.1, %v46_v0  ;;  %v51_v3 = vadd.f32 0.1, %v47_v1  ;;  %v48_v4 = vld [vmem:[#allocation5] sm:$0xff]  ;;  %v49_v5 = vld [vmem:[#allocation5 + $0x8] sm:$0xff] }
  0x1e   :  { %v52_v6 = vsub.f32 %v46_v0, %v48_v4  ;;  %v53_v7 = vsub.f32 %v47_v1, %v49_v5  ;;  %s70_s1 = sshll.u32 %s160_s0, 4  ;;  %s71_s1 = int_to_ptr.vmem [resolvable:$true] %s70_s1 }
  0x1f   :  { %86 = vrcp.f32 %v50_v2  ;;  %s130_s21 = scalar_lea.vmem %s71_s1, 128  ;;  %p135_p11 = scmp.lt.s32.totalorder %s71_s1, %s71_s1 }
  0x20   :  { %88 = vrcp.f32 %v51_v3  ;;  %p131_p10 = scmp.ne.s32.totalorder %s71_s1, %s130_s21  ;;  %p136_p12 = scmp.lt.s32.totalorder %s130_s21, %s130_s21 }
  0x22   :  { %p137_p13 = por %p136_p12, %p135_p11 }
  0x24   :  { %p138_p0 = pnand %p137_p13, %p131_p10 }
  0x2c   :  { %v87_v8 = vpop.eup %86 }
  0x2d   :  { %v89_v9 = vpop.eup %88  ;;  %v55_v10 = vmul.f32 %v87_v8, %v52_v6 }
  0x2e   :  { %v57_v11 = vmul.f32 %v89_v9, %v53_v7 }
  0x2f   :  { %v58_v12 = vand.u32 2147483647, %v55_v10 }
  0x30   :  { %v59_v13 = vand.u32 2147483647, %v57_v11 }
  0x32   :  { %v60_v14 = vadd.f32 %v59_v13, %v58_v12 }
  0x34   :  { %63 = vst [vmem:[#allocation7] sm:$0xff] %v60_v14 }
  0x35   :  { %141 = shalt.err (!%p138_p0)
}
  0x36   :  { %73 = dma.vmem_to_hbm [thread:$0]  %s71_s1, 128, %s187_s2, [#allocation4]  }
  0x37   :  { %154 = dma.done.wait [#allocation4], 128  }
  0x38   :  { %155 = vsyncadd [#allocation4], 4294967168 }
  0x39   :  { %77 = vsyncpa [#allocation3], 1 }
  0x3a   :  { %78 = vsyncpa [#allocation6], 1 }
  0x3b   :  { %79 = vsyncpa [#allocation4], 1 }

</bundles_post_ra>
